<compile_context>
chip_gen: v6e
topology: v6e:2x2x1
jax: 0.10.0
libtpu: 0.0.40
codegen_flags: <defaults>
</compile_context>

<pallas_src>
import jax
import jax.numpy as jnp
from jax.experimental import pallas as pl
from jax.experimental.pallas import tpu as pltpu


def vector_sim_kernel(in_ids_ref, out_ids_ref, ein_t_ref, eout_t_ref, bias_ref, o_ref):
    """One grid step computes `tb` logits, batch along lanes.

    in_ids_ref  : VMEM (1, tb)  int32     -- "in" entity ids for this tile
    out_ids_ref : VMEM (1, tb)  int32     -- "out" entity ids for this tile
    ein_t_ref   : VMEM (dim, num_entity)  -- transposed "in" embedding table
    eout_t_ref  : VMEM (dim, num_entity)  -- transposed "out" embedding table
    bias_ref    : SMEM (1,)     float32   -- scalar bias
    o_ref       : VMEM (1, tb)  float32   -- lane-dense logits for this tile
    """
    dim, num_entity = ein_t_ref.shape
    tb = o_ref.shape[-1]

    ids_in = in_ids_ref[...]     # (1, tb)
    ids_out = out_ids_ref[...]   # (1, tb)

    # One-hot (num_entity, tb) selector matrices (VPU compare against an iota).
    ent = jax.lax.broadcasted_iota(jnp.int32, (num_entity, tb), 0)
    oh_in = (ent == ids_in).astype(jnp.float32)
    oh_out = (ent == ids_out).astype(jnp.float32)

    # Gather-by-matmul on the MXU: e_t[d, b] = table[ids[b], d].
    e1_t = jnp.dot(ein_t_ref[...], oh_in, preferred_element_type=jnp.float32)    # (dim, tb)
    e2_t = jnp.dot(eout_t_ref[...], oh_out, preferred_element_type=jnp.float32)  # (dim, tb)

    # One elementwise multiply + one sublane reduce -> lane-dense (1, tb).
    logits = jnp.sum(e1_t * e2_t, axis=0, keepdims=True) + bias_ref[0]
    o_ref[...] = logits.astype(o_ref.dtype)


def vector_sim_forward(idxs, emb_in, emb_out, bias, *, tb=128):
    """Pallas-backed VectorSim.forward.

    idxs: (batch, 2) integer entity-id pairs; emb_*: (num_entity, dim) float32;
    bias: scalar / (1,) float32. Returns (batch,) float32 logits.
    """
    assert tb % 128 == 0, "batch tile must be lane-aligned (multiple of 128)"
    batch = idxs.shape[0]
    num_entity, dim = emb_in.shape

    padded = pl.cdiv(batch, tb) * tb
    grid = padded // tb

    # Lane-dense id rows: (1, padded) int32, batch along lanes. Pad value 0 is
    # arbitrary -- padded logits are sliced off below.
    ids = idxs.astype(jnp.int32)
    in_ids = jnp.zeros((1, padded), jnp.int32).at[0, :batch].set(ids[:, 0])
    out_ids = jnp.zeros((1, padded), jnp.int32).at[0, :batch].set(ids[:, 1])

    # Transpose tables once outside the kernel (layout plumbing only) so the
    # in-kernel gather is a plain NN matmul with batch on the lane axis.
    emb_in_t = jnp.asarray(emb_in, jnp.float32).T     # (dim, num_entity)
    emb_out_t = jnp.asarray(emb_out, jnp.float32).T   # (dim, num_entity)

    bias_arr = jnp.asarray(bias, jnp.float32).reshape((1,))

    grid_spec = pltpu.PrefetchScalarGridSpec(
        num_scalar_prefetch=0,
        grid=(grid,),
        in_specs=[
            pl.BlockSpec((1, tb), lambda i: (0, i)),               # in ids (lane-dense)
            pl.BlockSpec((1, tb), lambda i: (0, i)),               # out ids (lane-dense)
            pl.BlockSpec((dim, num_entity), lambda i: (0, 0)),     # emb_in^T, VMEM resident
            pl.BlockSpec((dim, num_entity), lambda i: (0, 0)),     # emb_out^T, VMEM resident
            pl.BlockSpec(memory_space=pltpu.MemorySpace.SMEM),     # scalar bias
        ],
        out_specs=pl.BlockSpec((1, tb), lambda i: (0, i)),
    )

    out = pl.pallas_call(
        vector_sim_kernel,
        grid_spec=grid_spec,
        out_shape=jax.ShapeDtypeStruct((1, padded), jnp.float32),
        compiler_params=pltpu.CompilerParams(
            dimension_semantics=("parallel",)),
    )(in_ids, out_ids, emb_in_t, emb_out_t, bias_arr)
    return out[0, :batch]


def vector_sim_reference(idxs, emb_in, emb_out, bias):
    e1 = emb_in[idxs[:, 0]]
    e2 = emb_out[idxs[:, 1]]
    return jnp.sum(e1 * e2, axis=-1) + jnp.asarray(bias, jnp.float32).reshape(())


if __name__ == "__main__":
    num_entity = 50
    dim = 32
    batch = 200   # deliberately NOT a multiple of the tile -> exercises padding

    key = jax.random.PRNGKey(0)
    k_in, k_out, k_idx = jax.random.split(key, 3)

    # torch.nn.Embedding default init ~ N(0, 1); separate_io=True -> two tables.
    emb_in = jax.random.normal(k_in, (num_entity, dim), dtype=jnp.float32)
    emb_out = jax.random.normal(k_out, (num_entity, dim), dtype=jnp.float32)
    # use_bias=True path: Parameter(torch.zeros(1))
    bias = jnp.zeros((1,), dtype=jnp.float32)

    idxs = jax.random.randint(k_idx, (batch, 2), 0, num_entity, dtype=jnp.int32)

    logits = vector_sim_forward(idxs, emb_in, emb_out, bias, tb=128)
    logits = jax.block_until_ready(logits)

    ref = vector_sim_reference(idxs, emb_in, emb_out, bias)
    assert logits.shape == (batch,)
    assert jnp.allclose(logits, ref, atol=1e-4, rtol=1e-4), (logits, ref)

    print("KERNEL_OK")
</pallas_src>

<mosaic_0001>
module attributes {stable_mosaic.version = 11 : i64} {
  func.func @vector_sim_kernel(%arg0: i32, %arg1: memref<1x128xi32, #tpu.memory_space<vmem>>, %arg2: memref<1x128xi32, #tpu.memory_space<vmem>>, %arg3: memref<32x50xf32, #tpu.memory_space<vmem>>, %arg4: memref<32x50xf32, #tpu.memory_space<vmem>>, %arg5: memref<1xf32, #tpu.memory_space<smem>>, %arg6: memref<1x128xf32, #tpu.memory_space<vmem>>) attributes {dimension_semantics = [#tpu.dimension_semantics<parallel>], iteration_bounds = array<i64: 2>, scalar_prefetch = 0 : i64, scratch_operands = 0 : i64, tpu.core_type = #tpu.core_type<tc>, window_params = [{transform_indices = @transform_0, window_bounds = array<i64: 1, 128>}, {transform_indices = @transform_1, window_bounds = array<i64: 1, 128>}, {pipeline_mode = #tpu.pipeline_mode<synchronous>, transform_indices = @transform_2, window_bounds = array<i64: 32, 50>}, {pipeline_mode = #tpu.pipeline_mode<synchronous>, transform_indices = @transform_3, window_bounds = array<i64: 32, 50>}, {transform_indices = @transform_4, window_bounds = array<i64: 1>}, {transform_indices = @transform_5, window_bounds = array<i64: 1, 128>}]} {
    %c0 = arith.constant 0 : index
    %c0_0 = arith.constant 0 : index
    %0 = vector.load %arg1[%c0, %c0_0] : memref<1x128xi32, #tpu.memory_space<vmem>>, vector<1x128xi32>
    %c0_1 = arith.constant 0 : index
    %c0_2 = arith.constant 0 : index
    %1 = vector.load %arg2[%c0_1, %c0_2] : memref<1x128xi32, #tpu.memory_space<vmem>>, vector<1x128xi32>
    %2 = tpu.iota {dimensions = array<i32: 0>} : vector<50x128xi32>
    %3 = vector.broadcast %0 : vector<1x128xi32> to vector<50x128xi32>
    %4 = arith.cmpi eq, %2, %3 : vector<50x128xi32>
    %5 = arith.extui %4 : vector<50x128xi1> to vector<50x128xi32>
    %6 = arith.sitofp %5 : vector<50x128xi32> to vector<50x128xf32>
    %7 = vector.broadcast %1 : vector<1x128xi32> to vector<50x128xi32>
    %8 = arith.cmpi eq, %2, %7 : vector<50x128xi32>
    %9 = arith.extui %8 : vector<50x128xi1> to vector<50x128xi32>
    %10 = arith.sitofp %9 : vector<50x128xi32> to vector<50x128xf32>
    %c0_3 = arith.constant 0 : index
    %c0_4 = arith.constant 0 : index
    %11 = vector.load %arg3[%c0_3, %c0_4] : memref<32x50xf32, #tpu.memory_space<vmem>>, vector<32x50xf32>
    %cst = arith.constant dense<0.000000e+00> : vector<32x128xf32>
    %12 = tpu.matmul %11, %6, %cst {dimension_numbers = #tpu.dot_dimension_numbers<[1], [0], [0], [1], [0, 0, 1, 1], [], []>} : vector<32x50xf32>, vector<50x128xf32>, vector<32x128xf32> -> vector<32x128xf32>
    %c0_5 = arith.constant 0 : index
    %c0_6 = arith.constant 0 : index
    %13 = vector.load %arg4[%c0_5, %c0_6] : memref<32x50xf32, #tpu.memory_space<vmem>>, vector<32x50xf32>
    %cst_7 = arith.constant dense<0.000000e+00> : vector<32x128xf32>
    %14 = tpu.matmul %13, %10, %cst_7 {dimension_numbers = #tpu.dot_dimension_numbers<[1], [0], [0], [1], [0, 0, 1, 1], [], []>} : vector<32x50xf32>, vector<50x128xf32>, vector<32x128xf32> -> vector<32x128xf32>
    %15 = arith.mulf %12, %14 : vector<32x128xf32>
    %cst_8 = arith.constant dense<0.000000e+00> : vector<128xf32>
    %16 = vector.multi_reduction <add>, %15, %cst_8 [0] : vector<32x128xf32> to vector<128xf32>
    %17 = vector.shape_cast %16 : vector<128xf32> to vector<1x128xf32>
    %c0_9 = arith.constant 0 : index
    %18 = memref.load %arg5[%c0_9] : memref<1xf32, #tpu.memory_space<smem>>
    %19 = vector.broadcast %18 : f32 to vector<1x128xf32>
    %20 = arith.addf %17, %19 : vector<1x128xf32>
    %c0_10 = arith.constant 0 : index
    %c0_11 = arith.constant 0 : index
    %21 = vector.load %arg6[%c0_10, %c0_11] : memref<1x128xf32, #tpu.memory_space<vmem>>, vector<1x128xf32>
    tpu.vector_store %arg6[%c0_10, %c0_11], %20 {strides = array<i32>} : memref<1x128xf32, #tpu.memory_space<vmem>>, vector<1x128xf32>,
    return
  }
  func.func @transform_0(%arg0: i32) -> (i32, i32) {
    %c0_i32 = arith.constant 0 : i32
    %c0_i32_0 = arith.constant 0 : i32
    return %c0_i32, %arg0 : i32, i32
  }
  func.func @transform_1(%arg0: i32) -> (i32, i32) {
    %c0_i32 = arith.constant 0 : i32
    %c0_i32_0 = arith.constant 0 : i32
    return %c0_i32, %arg0 : i32, i32
  }
  func.func @transform_2(%arg0: i32) -> (i32, i32) {
    %c0_i32 = arith.constant 0 : i32
    %c0_i32_0 = arith.constant 0 : i32
    %c0_i32_1 = arith.constant 0 : i32
    return %c0_i32, %c0_i32_0 : i32, i32
  }
  func.func @transform_3(%arg0: i32) -> (i32, i32) {
    %c0_i32 = arith.constant 0 : i32
    %c0_i32_0 = arith.constant 0 : i32
    %c0_i32_1 = arith.constant 0 : i32
    return %c0_i32, %c0_i32_0 : i32, i32
  }
  func.func @transform_4(%arg0: i32) -> i32 {
    %c0_i32 = arith.constant 0 : i32
    %c0_i32_0 = arith.constant 0 : i32
    return %c0_i32 : i32
  }
  func.func @transform_5(%arg0: i32) -> (i32, i32) {
    %c0_i32 = arith.constant 0 : i32
    %c0_i32_0 = arith.constant 0 : i32
    return %c0_i32, %arg0 : i32, i32
  }
}

</mosaic_0001>

<bundles_post_ra>
// kernel: tpu_custom_call.1
= control target key start
LH: loop header
LB: loop body
LE: loop exit
PB: predicated region body
PF: predicated region fallthrough
CT: control target
= control target key end

     0   :  { %s1238_s0 = inlined_call_operand.vmem [shape: s32[1,256], index: 0, kind: input, shape index: {}]   ;;  %s1239_s1 = inlined_call_operand.hbm [shape: s32[1,256], index: 1, kind: input, shape index: {}]   ;;  %s1240_s2 = inlined_call_operand.hbm [shape: f32[32,50], index: 2, kind: input, shape index: {}]   ;;  %s1241_s3 = inlined_call_operand.hbm [shape: f32[32,50], index: 3, kind: input, shape index: {}]   ;;  %s1242_s4 = inlined_call_operand.<no memory space> [shape: f32[1], index: 4, kind: input, shape index: {}]   ;;  %s1243_s5 = inlined_call_operand.hbm [shape: f32[1,256], index: 5, kind: output, shape index: {}]  }
   0x1   :  { %10 = sst [smem:[#allocation2]] %s1242_s4 }
   0x2   :  { %11 = vsyncpa [#allocation4], 0 }
   0x3   :  { %13 = vsyncpa [#allocation4 + $0x1], 0 }
   0x4   :  { %14 = vsyncpa [#allocation7], 0 }
   0x5   :  { %15 = vsyncpa [#allocation5], 0 }
   0x6   :  { %17 = vsyncpa [#allocation5 + $0x1], 0  ;;  %s1045_s20 = smov 0   ;;  %s1047_s21 = smov 0  }
   0x7   :  { %s1049_s22 = smov 0   ;;  %s1051_s23 = smov 0  }
   0x8 LB: > { %s1066_s4 = sadd.s32 4294967295, %s1002_s23   ;;  %s671_s24 = sadd.s32 4294967294, %s1002_s23   ;;  %s1002_s23 = sphi %s1051_s23, %s1265_s23   ;;  %s998_s22 = sphi %s1049_s22, %s1264_s22   ;;  %s994_s21 = sphi %s1047_s21, %s1263_s21   ;;  %s990_s20 = sphi %s1045_s20, %s1262_s20  }
   0x9   : > { %p69_p0 = scmp.ne.s32.totalorder %s994_s21, %s990_s20  ;;  %p1244_p1 = scmp.eq.s32.totalorder %s1066_s4, 0 }
   0xa   : > { %p162_p3 = scmp.eq.s32.totalorder %s671_s24, 1  ;;  %p672_p5 = scmp.ge.s32.totalorder %s1002_s23, 1 }
   0xb   : > { %p1075_p4 = por %p1244_p1, %p69_p0  ;;  %p169_p7 = scmp.lt.s32.totalorder %s1002_s23, 3 }
   0xc   : > { %p1080_p6 = por %p162_p3, %p69_p0  ;;  %s1004_s28 = smov [#allocation6]  }
   0xd   : > { %s1248_s25 = scalar_select %p1075_p4, 1, 0 }
   0xe   : > { %s1249_s26 = scalar_select %p1080_p6, 1, 0 }
   0xf   : > { %p1085_p8 = pnand %p672_p5, %p169_p7  ;;  %s181_s29 = sshll.u32 %s1004_s28, 4  ;;  %s182_s29 = int_to_ptr.vmem [resolvable:$true] %s181_s29 }
  0x10   : > { %s1005_s6 = smov [#allocation8]   ;;  %s865_s8 = scalar_lea.vmem %s182_s29, 512 }
  0x11   : > { %s1250_s27 = scalar_select %p1085_p8, 1, 0 }
  0x12   : > { %p795_p9 = pneg %p1085_p8  ;;  %s194_s7 = sshll.u32 %s1005_s6, 4  ;;  %s195_s7 = int_to_ptr.vmem [resolvable:$true] %s194_s7 }
  0x13   : > { %p866_p13 = scmp.ne.s32.totalorder %s182_s29, %s865_s8  ;;  %p873_p5 = scmp.lt.s32.totalorder %s182_s29, %s182_s29 }
  0x14   : > { %p1094_p11 = pnand %p795_p9, %p1244_p1  ;;  %p874_p7 = scmp.lt.s32.totalorder %s865_s8, %s865_s8 }
  0x16   : > { %p856_p12 = pneg %p1094_p11  ;;  %p875_p10 = por %p874_p7, %p873_p5 }
  0x18   : > { %p868_p0 = pnand %p866_p13, %p856_p12 }
  0x1a   : > { %p869_p3 = pneg %p868_p0 }
  0x1c   : > { %p876_p9 = pnand %p875_p10, %p869_p3 }
  0x1e   : > { %879 = shalt.err (!%p876_p9)
}
  0x1f   : > { %s1006_s9 = smov 128   ;;  %s1007_s10 = smov 8  }
  0x20   : > { %798 = dma.hbm_to_vmem [thread:$0]  (!%p1094_p11), %s1240_s2, 512, %s182_s29, [#allocation7], %s1006_s9, %s1006_s9, %s1007_s10  }
  0x21   : > { %s891_s13 = scalar_lea.vmem %s195_s7, 512  ;;  %p899_p2 = scmp.lt.s32.totalorder %s195_s7, %s195_s7 }
  0x22   : > { %p892_p1 = scmp.ne.s32.totalorder %s195_s7, %s891_s13  ;;  %p900_p6 = scmp.lt.s32.totalorder %s891_s13, %s891_s13 }
  0x24   : > { %p894_p13 = pnand %p892_p1, %p856_p12  ;;  %p901_p5 = por %p900_p6, %p899_p2 }
  0x26   : > { %p895_p0 = pneg %p894_p13 }
  0x28   : > { %p902_p10 = pnand %p901_p5, %p895_p0 }
  0x2a   : > { %905 = shalt.err (!%p902_p10)
}
  0x2b   : > { %801 = dma.hbm_to_vmem [thread:$0]  (!%p1094_p11), %s1241_s3, 512, %s195_s7, [#allocation7], %s1006_s9, %s1006_s9, %s1007_s10  }
  0x2c   : > { %s1117_s16 = sadd.s32 1, %s1002_s23   ;;  %s56_s17 = sadd.s32 1, %s998_s22 }
  0x2d   : > { %s53_s18 = ssub.s32 %s1002_s23, %s1117_s16  ;;  %p63_p1 = scmp.ne.s32.totalorder %s998_s22, %s994_s21 }
  0x2e   : > { %p54_p2 = scmp.eq.s32.totalorder %s53_s18, 0  ;;  %p64_p6 = scmp.eq.s32.totalorder %s1002_s23, 0 }
  0x2f   : > { %p1252_p12 = scmp.eq.s32.totalorder %s1066_s4, 1  ;;  %p812_p7 = scmp.lt.s32.totalorder %s1002_s23, 2 }
  0x30   : > { %s1133_s24 = scalar_select %p54_p2, %s998_s22, %s56_s17  }
  0x31   : > { %p1127_p3 = por %p1252_p12, %p63_p1  ;;  %p65_p9 = por %p64_p6, %p63_p1 }
  0x32   : > { %s217_s28 = sand.u32 1, %s998_s22   ;;  %s676_s29 = sshll.u32 %s1002_s23, 4 }
  0x33   : > { %s1253_s19 = scalar_select %p1127_p3, 1, 0 }
  0x34   : > { %s220_s30 = scalar_lea.vmem [#allocation3], %s217_s28  ;;  %s1140_s9 = scalar_lea.hbm %s1239_s1, %s676_s29 }
  0x35   : > { %s227_s6 = sshll.u32 %s220_s30, 4  ;;  %p1142_p11 = pnand %p812_p7, %p65_p9  ;;  %s228_s6 = int_to_ptr.vmem [resolvable:$true] %s227_s6 }
  0x36   : > { %s218_s11 = scalar_lea.sflag [#allocation4], %s217_s28  ;;  %s906_s12 = scalar_lea.hbm %s1140_s9, 16 }
  0x37   : > { %p907_p13 = scmp.ne.s32.totalorder %s1140_s9, %s906_s12  ;;  %p908_p0 = pneg %p1142_p11 }
  0x38   : > { %s911_s15 = scalar_lea.hbm %s1239_s1, 32  ;;  %p912_p1 = scmp.lt.s32.totalorder %s1140_s9, %s1239_s1 }
  0x39   : > { %p909_p5 = pnand %p908_p0, %p907_p13  ;;  %p913_p2 = scmp.lt.s32.totalorder %s911_s15, %s906_s12 }
  0x3b   : > { %p910_p10 = pneg %p909_p5  ;;  %p914_p6 = por %p913_p2, %p912_p1 }
  0x3d   : > { %p915_p12 = pnand %p914_p6, %p910_p10 }
  0x3f   : > { %918 = shalt.err (!%p915_p12)
}
  0x40   : > { %s919_s29 = scalar_lea.vmem %s228_s6, 16  ;;  %s1008_s28 = smov [#allocation3]  }
  0x41   : > { %p920_p7 = scmp.ne.s32.totalorder %s228_s6, %s919_s29  ;;  %s924_s30 = sshll.u32 %s1008_s28, 4  ;;  %s925_s30 = int_to_ptr.vmem [resolvable:$false] %s924_s30 }
  0x42   : > { %s926_s7 = scalar_lea.vmem %s925_s30, 32  ;;  %p927_p13 = scmp.lt.s32.totalorder %s228_s6, %s925_s30 }
  0x43   : > { %p922_p9 = pnand %p920_p7, %p908_p0  ;;  %p928_p5 = scmp.lt.s32.totalorder %s926_s7, %s919_s29 }
  0x45   : > { %p923_p3 = pneg %p922_p9  ;;  %p929_p4 = por %p928_p5, %p927_p13 }
  0x47   : > { %p930_p8 = pnand %p929_p4, %p923_p3 }
  0x49   : > { %933 = shalt.err (!%p930_p8)
}
  0x4a   : > { %805 = dma.hbm_to_vmem [thread:$0]  (!%p1142_p11), %s1140_s9, 16, %s228_s6, %s218_s11  }
  0x4b   : > { %p1255_p10 = scmp.ne.s32.totalorder %s1250_s27, 0 }
  0x4c   : > { %s1163_s8 = sand.u32 (!%p1255_p10), 1, %s994_s21   ;;  %p1256_p0 = scmp.ne.s32.totalorder (!%p1255_p10), %s1248_s25, 0 }
  0x4d   : > { %236 = sbr.rel (%p1255_p10) target bundleno = 340 (0x154), region = 40  ;;  %s239_s12 = scalar_lea.sflag (!%p1255_p10), [#allocation4], %s1163_s8 }
  0x4e   : > { %s241_s13 = scalar_lea.vmem (!%p1255_p10), [#allocation3], %s1163_s8 }
  0x52   : > { %977 = dma.done.wait (%p1256_p0), %s239_s12, 16  }
  0x53   : > { %979 = vsyncadd (%p1256_p0), %s239_s12, 4294967280  ;;  %p1257_p4 = scmp.eq.s32.totalorder %s1066_s4, 0 }
  0x55   : > { %981 = dma.done.wait (%p1257_p4), [#allocation7], 1024   ;;  %p1258_p8 = pmov %p1257_p4 }
  0x56   : > { %p277_p3 = scmp.lt.s32.totalorder %s1066_s4, 1  ;;  %v282_v0 = vlaneseq  ;;  %vm344_vm0 = vcmask 408576   ;;  %vm357_vm1 = vcmask 1041408   ;;  %v688_v5 = vld [vmem:[%s241_s13] ss:$0 sm:$0xff]  ;;  %v340_v7 = vld [vmem:[#allocation6] sm:$0xff] }
  0x57   : > { %983 = vsyncadd (%p1258_p8), [#allocation7], 4294966272  ;;  %757 = vmatprep.mubr.msk.f32.mxu0 %vm344_vm0, %v340_v7  ;;  %v446_v9 = vld [vmem:[#allocation8] sm:$0xff]  ;;  %v1009_v10 = vmov 0.0   ;;  %v1010_v14 = vmov 1.0   ;;  %v341_v16 = vld [vmem:[#allocation6 + $0x8] sm:$0xff] }
  0x58   : > { %s278_s27 = scalar_select %p277_p3, %s1066_s4, 1  ;;  %v1177_v1 = vshrl.u32 %v282_v0, 7  ;;  %777 = vmatprep.mubr.msk.f32.mxu1 %vm344_vm0, %v446_v9  ;;  %v447_v17 = vld [vmem:[#allocation8 + $0x8] sm:$0xff]  ;;  %v342_v18 = vld [vmem:[#allocation6 + $0x10] sm:$0xff]  ;;  %v343_v20 = vld [vmem:[#allocation6 + $0x18] sm:$0xff] }
  0x59   : > { %v448_v19 = vld [vmem:[#allocation8 + $0x10] sm:$0xff]  ;;  %v449_v21 = vld [vmem:[#allocation8 + $0x18] sm:$0xff]  ;;  %s563_s25 = sld [smem:[#allocation2]]  ;;  %s718_s11 = sshll.u32 %s1066_s4, 4 }
  0x5a   : > { %s279_s10 = scalar_lea.vmem %s1238_s0, %s278_s27  ;;  %v289_v2 = vadd.s32 48, %v1177_v1  ;;  %v288_v3 = vadd.s32 40, %v1177_v1  ;;  %v287_v6 = vadd.s32 32, %v1177_v1  ;;  %v286_v8 = vadd.s32 24, %v1177_v1  ;;  %s276_s14 = scalar_lea.vmem [#allocation9], %s1163_s8 }
  0x5b   : > { %v680_v4 = vld [vmem:[%s279_s10] ss:$0 sm:$0xff]  ;;  %v285_v13 = vadd.s32 16, %v1177_v1  ;;  %v284_v15 = vadd.s32 8, %v1177_v1  ;;  %vm319_vm15 = vcmp.eq.s32.totalorder %v1177_v1, %v688_v5  ;;  %s580_s15 = sshll.u32 %s276_s14, 4  ;;  %s578_s29 = scalar_lea.hbm %s1243_s5, %s718_s11  ;;  %s581_s15 = int_to_ptr.vmem [resolvable:$true] %s580_s15 }
  0x5c   : > { %vm300_vm2 = vcmp.eq.s32.totalorder %v289_v2, %v680_v4  ;;  %vm325_vm3 = vcmp.eq.s32.totalorder %v289_v2, %v688_v5  ;;  %vm299_vm4 = vcmp.eq.s32.totalorder %v288_v3, %v680_v4  ;;  %vm324_vm5 = vcmp.eq.s32.totalorder %v288_v3, %v688_v5  ;;  %s568_s28 = scalar_lea.sflag [#allocation5], %s1163_s8  ;;  %s934_s30 = scalar_lea.vmem %s581_s15, 16 }
  0x5d   : > { %v687_v11 = vsel %vm300_vm2, 1.0, %v1009_v10  ;;  %v695_v12 = vsel %vm325_vm3, 1.0, %v1009_v10  ;;  %vm298_vm6 = vcmp.eq.s32.totalorder %v287_v6, %v680_v4  ;;  %vm323_vm7 = vcmp.eq.s32.totalorder %v287_v6, %v688_v5  ;;  %p935_p11 = scmp.ne.s32.totalorder %s581_s15, %s934_s30  ;;  %p1259_p1 = scmp.ne.s32.totalorder %s1253_s19, 0 }
  0x5e   : > { %743 = vmatprep.subr.msk.mxu0 %vm357_vm1, %v687_v11  ;;  %763 = vmatprep.subr.msk.mxu1 %vm357_vm1, %v695_v12  ;;  %vm297_vm8 = vcmp.eq.s32.totalorder %v286_v8, %v680_v4  ;;  %vm322_vm9 = vcmp.eq.s32.totalorder %v286_v8, %v688_v5  ;;  %vm296_vm10 = vcmp.eq.s32.totalorder %v285_v13, %v680_v4  ;;  %s1011_s7 = smov [#allocation9]  }
  0x5f   : > { %744 = vmatpush3.msk.msra.mxu0 %vm357_vm1, %v687_v11  ;;  %764 = vmatpush3.msk.msra.mxu1 %vm357_vm1, %v695_v12  ;;  %vm321_vm11 = vcmp.eq.s32.totalorder %v285_v13, %v688_v5  ;;  %vm295_vm12 = vcmp.eq.s32.totalorder %v284_v15, %v680_v4  ;;  %vm320_vm13 = vcmp.eq.s32.totalorder %v284_v15, %v688_v5  ;;  %v564_v42 = vstv %s563_s25  ;;  %p936_p2 = pnand %p935_p11, %p1259_p1  ;;  %s938_s12 = sshll.u32 %s1011_s7, 4  ;;  %s939_s12 = int_to_ptr.vmem [resolvable:$false] %s938_s12 }
  0x60   : > { %745 = vmatprep.subr.msk.mxu0 %vm299_vm4, %v1010_v14  ;;  %765 = vmatprep.subr.msk.mxu1 %vm324_vm5, %v1010_v14  ;;  %vm294_vm14 = vcmp.eq.s32.totalorder %v1177_v1, %v680_v4  ;;  %s940_s4 = scalar_lea.vmem %s939_s12, 32  ;;  %p941_p12 = scmp.lt.s32.totalorder %s581_s15, %s939_s12 }
  0x61   : > { %746 = vmatpush3.msk.msra.mxu0 %vm299_vm4, %v1010_v14  ;;  %766 = vmatpush3.msk.msra.mxu1 %vm324_vm5, %v1010_v14  ;;  %p937_p6 = pneg %p936_p2  ;;  %p942_p7 = scmp.lt.s32.totalorder %s940_s4, %s934_s30 }
  0x62   : > { %747 = vmatprep.subr.msk.mxu0 %vm298_vm6, %v1010_v14  ;;  %767 = vmatprep.subr.msk.mxu1 %vm323_vm7, %v1010_v14 }
  0x63   : > { %748 = vmatpush3.msk.msra.mxu0 %vm298_vm6, %v1010_v14  ;;  %768 = vmatpush3.msk.msra.mxu1 %vm323_vm7, %v1010_v14  ;;  %p943_p9 = por %p942_p7, %p941_p12 }
  0x64   : > { %749 = vmatprep.subr.msk.mxu0 %vm297_vm8, %v1010_v14  ;;  %769 = vmatprep.subr.msk.mxu1 %vm322_vm9, %v1010_v14 }
  0x65   : > { %750 = vmatpush3.msk.msra.mxu0 %vm297_vm8, %v1010_v14  ;;  %770 = vmatpush3.msk.msra.mxu1 %vm322_vm9, %v1010_v14  ;;  %p944_p13 = pnand %p943_p9, %p937_p6 }
  0x66   : > { %751 = vmatprep.subr.msk.mxu0 %vm296_vm10, %v1010_v14  ;;  %771 = vmatprep.subr.msk.mxu1 %vm321_vm11, %v1010_v14 }
  0x67   : > { %752 = vmatpush3.msk.msra.mxu0 %vm296_vm10, %v1010_v14  ;;  %772 = vmatpush3.msk.msra.mxu1 %vm321_vm11, %v1010_v14 }
  0x68   : > { %753 = vmatprep.subr.msk.mxu0 %vm295_vm12, %v1010_v14  ;;  %773 = vmatprep.subr.msk.mxu1 %vm320_vm13, %v1010_v14 }
  0x69   : > { %754 = vmatpush3.msk.msra.mxu0 %vm295_vm12, %v1010_v14  ;;  %774 = vmatpush3.msk.msra.mxu1 %vm320_vm13, %v1010_v14 }
  0x6a   : > { %755 = vmatprep.subr.msk.mxu0 %vm294_vm14, %v1010_v14  ;;  %775 = vmatprep.subr.msk.mxu1 %vm319_vm15, %v1010_v14 }
  0x6b   : > { %756 = vmatpush3.msk.msra.mxu0 %vm294_vm14, %v1010_v14  ;;  %776 = vmatpush3.msk.msra.mxu1 %vm319_vm15, %v1010_v14 }
  0x6c   : > { %758 = vmatmul.mubr.msk.f32.vlgmr.msra.gmra.mxu0 %vm344_vm0, %v341_v16  ;;  %778 = vmatmul.mubr.msk.f32.vlgmr.msra.gmra.mxu1 %vm344_vm0, %v447_v17 }
  0x6d   : > { %760 = vmatprep.mubr.msk.f32.mxu0 %vm344_vm0, %v342_v18  ;;  %780 = vmatprep.mubr.msk.f32.mxu1 %vm344_vm0, %v448_v19 }
  0x70   : > { %761 = vmatmul.mubr.msk.f32.gmra.mxu0 %vm344_vm0, %v343_v20  ;;  %781 = vmatmul.mubr.msk.f32.gmra.mxu1 %vm344_vm0, %v449_v21 }
 0x12c   : > { %v759_v22 = vpop.f32.mrf.mxu0  ;;  %v779_v23 = vpop.f32.mrf.mxu1 }
 0x12d   : > { %v551_v29 = vmul.f32 %v779_v23, %v759_v22 }
 0x12e   : > { %v427_v24 = vpop.f32.mrf.mxu0  ;;  %v531_v25 = vpop.f32.mrf.mxu1 }
 0x12f   : > { %v550_v26 = vmul.f32 %v531_v25, %v427_v24 }
 0x130   : > { %v762_v27 = vpop.f32.mrf.mxu0  ;;  %v782_v28 = vpop.f32.mrf.mxu1 }
 0x131   : > { %v554_v32 = vadd.f32 %v551_v29, %v550_v26  ;;  %v553_v34 = vmul.f32 %v782_v28, %v762_v27 }
 0x132   : > { %v437_v30 = vpop.f32.mrf.mxu0  ;;  %v541_v31 = vpop.f32.mrf.mxu1 }
 0x133   : > { %v552_v33 = vmul.f32 %v541_v31, %v437_v30 }
 0x135   : > { %v555_v35 = vadd.f32 %v554_v32, %v552_v33 }
 0x137   : > { %v556_v36 = vadd.f32 %v555_v35, %v553_v34 }
 0x139   : > { %v557_v37 = vrot.slane %v556_v36, 4 }
 0x13b   : > { %v558_v38 = vadd.f32 %v557_v37, %v556_v36 }
 0x13d   : > { %v559_v39 = vrot.slane %v558_v38, 2 }
 0x13f   : > { %v560_v40 = vadd.f32 %v559_v39, %v558_v38 }
 0x141   : > { %v561_v41 = vrot.slane %v560_v40, 1 }
 0x143   : > { %v562_v43 = vadd.f32 %v561_v41, %v560_v40 }
 0x145   : > { %v565_v44 = vadd.f32 %v564_v42, %v562_v43 }
 0x147   : > { %566 = vst [vmem:[%s276_s14] sm:$0x1] %v565_v44 }
 0x148   : > { %947 = shalt.err (!%p944_p13)
}
 0x149   : > { %s948_s13 = scalar_lea.hbm %s578_s29, 16  ;;  %s952_s6 = scalar_lea.hbm %s1243_s5, 32 }
 0x14a   : > { %p949_p5 = scmp.ne.s32.totalorder %s578_s29, %s948_s13  ;;  %p953_p4 = scmp.lt.s32.totalorder %s578_s29, %s1243_s5 }
 0x14b   : > { %p954_p8 = scmp.lt.s32.totalorder %s952_s6, %s948_s13 }
 0x14c   : > { %p950_p10 = pnand %p949_p5, %p1259_p1 }
 0x14d   : > { %p955_p3 = por %p954_p8, %p953_p4 }
 0x14e   : > { %p951_p0 = pneg %p950_p10 }
 0x150   : > { %p956_p11 = pnand %p955_p3, %p951_p0 }
 0x152   : > { %959 = shalt.err (!%p956_p11)
}
 0x153   : > { %793 = dma.vmem_to_hbm [thread:$0]  (%p1259_p1), %s581_s15, 16, %s578_s29, %s568_s28  }
 0x154 PF: > { %s592_s25 = sand.u32 1, %s990_s20   ;;  %p1260_p2 = scmp.ne.s32.totalorder %s1249_s26, 0 }
 0x155   : > { %p1261_p6 = scmp.ge.s32.totalorder %s1002_s23, 2  ;;  %s593_s11 = scalar_lea.sflag [#allocation5], %s592_s25 }
 0x157   : > { %p807_p12 = pnand %p1261_p6, %p1260_p2 }
 0x159   : > { %p808_p7 = pneg %p807_p12 }
 0x15b   : > { %985 = dma.done.wait (%p808_p7), %s593_s11, 16  }
 0x15c   : > { %987 = vsyncadd (%p808_p7), %s593_s11, 4294967280  ;;  %p20_p9 = scmp.ge.s32.totalorder %s1117_s16, 4   ;;  %s1262_s20 = smov %s994_s21 }
 0x15d   : > { %s1263_s21 = smov %s998_s22  ;;  %s1264_s22 = smov %s1133_s24 }
 0x15e   : > { %s1265_s23 = smov %s1117_s16  ;;  %22 = sbr.rel (!%p20_p9) target bundleno = 8 (0x8), region = 96 }
 0x163   :  { %597 = vsyncpa [#allocation4], 1 }
 0x164   :  { %599 = vsyncpa [#allocation4 + $0x1], 1 }
 0x165   :  { %600 = vsyncpa [#allocation7], 1 }
 0x166   :  { %601 = vsyncpa [#allocation5], 1 }
 0x167   :  { %603 = vsyncpa [#allocation5 + $0x1], 1 }

</bundles_post_ra>
